<compile_context>
chip_gen: v5e
topology: v5e:2x2
jax: 0.10.0
libtpu: 0.0.40
codegen_flags: <defaults>
</compile_context>

<pallas_src>
import jax
import jax.numpy as jnp
from jax import lax
from jax.experimental import pallas as pl
from jax.experimental.pallas import tpu as pltpu

# MXU operand dtype for the deform-conv kernel (f32 accumulation is kept).
_MXU_DTYPE = jnp.bfloat16


def _spatial_tiles(h_out, w_out):
    """Smallest whole-row output tile whose flat pixel count is a multiple of 128."""
    for tile_ho in range(1, h_out + 1):
        if h_out % tile_ho == 0 and (tile_ho * w_out) % 128 == 0:
            return tile_ho, h_out // tile_ho
    return h_out, 1  # fall back to a single full tile (always a legal block)


# ---------------------------------------------------------------------------
# Pallas kernel 1: regular conv (conv_offset) as one im2col matmul per tile.
# Input is already zero-padded in the wrapper.  Output layout: (B, P, n_off).
# Kept in f32 (tiny matmul; offsets feed sampling coordinates, keep full precision).
# ---------------------------------------------------------------------------
def _conv_offset_pallas(xpad, w, b, *, kh, kw, stride, dilation, h_out, w_out,
                        tile_ho, n_tiles):
    B, Hp, Wp, C2 = xpad.shape
    kc2, n_off = w.shape
    P = h_out * w_out
    TP = tile_ho * w_out
    n_rows = (tile_ho - 1) * stride + 1
    n_cols = (w_out - 1) * stride + 1

    def kernel(xp_ref, w_ref, b_ref, o_ref):
        t = pl.program_id(1)
        row0 = t * (tile_ho * stride)
        cols = []
        for ki in range(kh):
            rows = xp_ref[0, pl.ds(row0 + ki * dilation, n_rows)]   # (n_rows, Wp, C2)
            rows = rows[::stride]                                   # (tile_ho, Wp, C2)
            for kj in range(kw):
                c0 = kj * dilation
                patch = rows[:, c0:c0 + n_cols:stride, :]           # (tile_ho, w_out, C2)
                cols.append(patch.reshape(TP, C2).astype(jnp.float32))
        slab = jnp.concatenate(cols, axis=-1)                       # (TP, kh*kw*C2)
        acc = jnp.dot(slab, w_ref[...].astype(jnp.float32),
                      preferred_element_type=jnp.float32)           # (TP, n_off)
        o_ref[0] = (acc + b_ref[...]).astype(o_ref.dtype)

    return pl.pallas_call(
        kernel,
        out_shape=jax.ShapeDtypeStruct((B, P, n_off), xpad.dtype),
        grid_spec=pltpu.PrefetchScalarGridSpec(
            num_scalar_prefetch=0,
            grid=(B, n_tiles),
            in_specs=[
                pl.BlockSpec((1, Hp, Wp, C2), lambda bb, tt: (bb, 0, 0, 0)),
                pl.BlockSpec((kc2, n_off), lambda bb, tt: (0, 0)),   # VMEM-resident
                pl.BlockSpec((1, n_off), lambda bb, tt: (0, 0)),
            ],
            out_specs=pl.BlockSpec((1, TP, n_off), lambda bb, tt: (bb, tt, 0)),
        ),
        compiler_params=pltpu.CompilerParams(
            dimension_semantics=("parallel", "parallel")),
    )(xpad, w, b)


# ---------------------------------------------------------------------------
# Pallas kernel 2: modulated deformable conv (torchvision DeformConv2d semantics).
# Offset channel layout: 2*(og*K + tap) = dy, 2*(og*K + tap) + 1 = dx.
# Bilinear sampling is expressed as S @ x_flat, where S is built from one-hot
# corner matches with (bilinear weight * validity * sigmoid(mask)) folded into the
# per-corner (TP,1) scalar weight.  The 9 per-tap sampled tensors are fused into
# one weight contraction per group.  Output layout: (B, OC, P), lane-dense stores.
# ---------------------------------------------------------------------------
def _dcn_pallas(x, offset, mask_logits, w, b, *, kh, kw, stride, padding,
                dilation, groups, h_out, w_out, tile_ho, n_tiles):
    B, H, W, C = x.shape
    K = kh * kw
    Cg = C // groups
    OCg = w.shape[1]
    OC = groups * OCg
    P = h_out * w_out
    TP = tile_ho * w_out
    HW = H * W
    cdt = _MXU_DTYPE

    def kernel(x_ref, off_ref, msk_ref, w_ref, b_ref, o_ref):
        t = pl.program_id(1)
        xx = x_ref[0].astype(jnp.float32)                           # (H, W, C)
        off = off_ref[0].astype(jnp.float32)                        # (TP, 2*G*K)
        msk = jax.nn.sigmoid(msk_ref[0].astype(jnp.float32))        # (TP, G*K)

        # Output-pixel coordinates of this row tile, as (TP, 1) columns.
        iy = (lax.broadcasted_iota(jnp.int32, (tile_ho, w_out), 0)
              + t * tile_ho).astype(jnp.float32).reshape(TP, 1)
        ix = lax.broadcasted_iota(jnp.int32, (tile_ho, w_out), 1
                                  ).astype(jnp.float32).reshape(TP, 1)
        base_y = iy * stride - padding
        base_x = ix * stride - padding
        q_idx = lax.broadcasted_iota(jnp.int32, (TP, HW), 1)        # flat input index

        group_out = []
        for og in range(groups):
            xg = xx[:, :, og * Cg:(og + 1) * Cg].reshape(HW, Cg).astype(cdt)
            w_g = w_ref[og].astype(cdt)                              # (OCg, K*Cg)
            sampled = []
            for ki in range(kh):
                for kj in range(kw):
                    tap = ki * kw + kj
                    cidx = og * K + tap
                    dy = off[:, 2 * cidx:2 * cidx + 1]
                    dx = off[:, 2 * cidx + 1:2 * cidx + 2]
                    m = msk[:, cidx:cidx + 1]
                    py = base_y + ki * dilation + dy
                    px = base_x + kj * dilation + dx
                    y0 = jnp.floor(py)
                    x0 = jnp.floor(px)
                    ly = py - y0
                    lx = px - x0
                    y0i = y0.astype(jnp.int32)
                    x0i = x0.astype(jnp.int32)

                    S = None
                    for dyc in (0, 1):
                        for dxc in (0, 1):
                            yc = y0i + dyc
                            xc = x0i + dxc
                            wy = ly if dyc else 1.0 - ly
                            wx = lx if dxc else 1.0 - lx
                            valid = ((yc >= 0) & (yc < H) & (xc >= 0) & (xc < W))
                            # mask + bilinear + validity folded into one (TP,1) weight
                            wgt = wy * wx * m * valid.astype(jnp.float32)
                            fidx = yc * W + xc                       # (TP, 1) int32
                            contrib = jnp.where(fidx == q_idx, wgt, 0.0)
                            S = contrib if S is None else S + contrib
                    sampled.append(
                        jnp.dot(S.astype(cdt), xg,
                                preferred_element_type=jnp.float32))  # (TP, Cg)
            samp = jnp.concatenate(sampled, axis=-1)                  # (TP, K*Cg)
            # Single fused weight contraction -> channel-first (OCg, TP).
            acc_g = lax.dot_general(
                w_g, samp.astype(cdt),
                dimension_numbers=(((1,), (1,)), ((), ())),
                preferred_element_type=jnp.float32)
            group_out.append(acc_g)

        acc = group_out[0] if groups == 1 else jnp.concatenate(group_out, axis=0)
        o_ref[0] = (acc + b_ref[...]).astype(o_ref.dtype)             # (OC, TP)

    return pl.pallas_call(
        kernel,
        out_shape=jax.ShapeDtypeStruct((B, OC, P), x.dtype),
        grid_spec=pltpu.PrefetchScalarGridSpec(
            num_scalar_prefetch=0,
            grid=(B, n_tiles),
            in_specs=[
                pl.BlockSpec((1, H, W, C), lambda bb, tt: (bb, 0, 0, 0)),
                pl.BlockSpec((1, TP, 2 * groups * K), lambda bb, tt: (bb, tt, 0)),
                pl.BlockSpec((1, TP, groups * K), lambda bb, tt: (bb, tt, 0)),
                pl.BlockSpec((groups, OCg, K * Cg), lambda bb, tt: (0, 0, 0)),
                pl.BlockSpec((OC, 1), lambda bb, tt: (0, 0)),
            ],
            out_specs=pl.BlockSpec((1, OC, TP), lambda bb, tt: (bb, 0, tt)),
        ),
        compiler_params=pltpu.CompilerParams(
            dimension_semantics=("parallel", "parallel")),
    )(x, offset, mask_logits, w, b)


# ---------------------------------------------------------------------------
# Parameter init (deterministic, matches the module's __init__ shapes).
# ---------------------------------------------------------------------------
def init_params(key, in_channels, out_channels, kernel_size, group):
    kh, kw = kernel_size
    k1, k2 = jax.random.split(key)
    n_off = group * 3 * kh * kw
    return {
        # conv_offset: zero-initialized (init_weights)
        "conv_offset_w": jnp.zeros((n_off, 2 * in_channels, kh, kw), jnp.float32),
        "conv_offset_b": jnp.zeros((n_off,), jnp.float32),
        # deform_conv weights/bias (deterministic synthetic values)
        "deform_w": 0.1 * jax.random.normal(
            k1, (out_channels, in_channels // group, kh, kw), jnp.float32),
        "deform_b": 0.1 * jax.random.normal(k2, (out_channels,), jnp.float32),
    }


# ---------------------------------------------------------------------------
# Forward wrapper: NCHW in / NCHW out (matches the PyTorch module).
# ---------------------------------------------------------------------------
def dcnv2_ref_forward(x_nchw, ref_nchw, params, *, kernel_size, stride=1,
                      padding=0, group=1, dilation=1):
    kh, kw = kernel_size
    B, C, H, W = x_nchw.shape
    h_out = (H + 2 * padding - dilation * (kh - 1) - 1) // stride + 1
    w_out = (W + 2 * padding - dilation * (kw - 1) - 1) // stride + 1
    P = h_out * w_out
    tile_ho, n_tiles = _spatial_tiles(h_out, w_out)

    x = jnp.transpose(x_nchw, (0, 2, 3, 1))
    r = jnp.transpose(ref_nchw, (0, 2, 3, 1))
    concat = jnp.concatenate([x, r], axis=-1)
    cpad = jnp.pad(concat, ((0, 0), (padding, padding), (padding, padding), (0, 0)))

    # conv_offset weight (Noff, 2C, kh, kw) -> (kh*kw*2C, Noff)  [tap-major rows]
    w_off = jnp.transpose(params["conv_offset_w"], (2, 3, 1, 0)).reshape(
        kh * kw * 2 * C, -1)
    b_off = params["conv_offset_b"][None, :]
    off_out = _conv_offset_pallas(
        cpad, w_off, b_off, kh=kh, kw=kw, stride=stride, dilation=dilation,
        h_out=h_out, w_out=w_out, tile_ho=tile_ho, n_tiles=n_tiles)   # (B, P, 3*G*K)

    gk = group * kh * kw
    offset = off_out[..., :2 * gk]        # == torch.cat((o1, o2), dim=1), flat-P layout
    mask_logits = off_out[..., 2 * gk:]   # sigmoid applied inside the deform kernel

    OC = params["deform_w"].shape[0]
    Cg = C // group
    OCg = OC // group
    # deform weight (OC, Cg, kh, kw) -> (G, OCg, kh*kw*Cg)  [tap-major contraction rows]
    w5 = params["deform_w"].reshape(group, OCg, Cg, kh, kw)
    w_dcn = jnp.transpose(w5, (0, 1, 3, 4, 2)).reshape(group, OCg, kh * kw * Cg)
    b_dcn = params["deform_b"][:, None]

    out_cf = _dcn_pallas(
        x, offset, mask_logits, w_dcn, b_dcn, kh=kh, kw=kw, stride=stride,
        padding=padding, dilation=dilation, groups=group, h_out=h_out,
        w_out=w_out, tile_ho=tile_ho, n_tiles=n_tiles)                # (B, OC, P)
    return out_cf.reshape(B, OC, h_out, w_out)                        # NCHW, no transpose


if __name__ == "__main__":
    key = jax.random.PRNGKey(0)
    kx, kr, kp = jax.random.split(key, 3)

    B, C, H, W = 2, 4, 16, 16
    OC = 4
    ks = (3, 3)
    group = 1

    x = jax.random.normal(kx, (B, C, H, W), jnp.float32)
    ref = jax.random.normal(kr, (B, C, H, W), jnp.float32)
    params = init_params(kp, C, OC, ks, group)

    out = dcnv2_ref_forward(x, ref, params, kernel_size=ks, stride=1, padding=1,
                            group=group, dilation=1)
    out = jax.block_until_ready(out)
    assert out.shape == (B, OC, H, W)

    # Sanity check: with zero-init conv_offset, DCNv2 == 0.5 * conv2d(x, W) + b.
    # Tolerance is loosened slightly because the deform kernel uses bf16 MXU operands.
    ref_out = 0.5 * lax.conv_general_dilated(
        x, params["deform_w"], window_strides=(1, 1), padding=((1, 1), (1, 1)),
        dimension_numbers=("NCHW", "OIHW", "NCHW"), feature_group_count=group)
    ref_out = ref_out + params["deform_b"][None, :, None, None]
    assert jnp.allclose(out, ref_out, atol=3e-2, rtol=3e-2), float(
        jnp.max(jnp.abs(out - ref_out)))

    print("KERNEL_OK")
</pallas_src>

<mosaic_0001>
module attributes {stable_mosaic.version = 11 : i64} {
  func.func @kernel(%arg0: i32, %arg1: i32, %arg2: memref<1x18x18x8xf32, #tpu.memory_space<vmem>>, %arg3: memref<72x27xf32, #tpu.memory_space<vmem>>, %arg4: memref<1x27xf32, #tpu.memory_space<vmem>>, %arg5: memref<1x128x27xf32, #tpu.memory_space<vmem>>) attributes {dimension_semantics = [#tpu.dimension_semantics<parallel>, #tpu.dimension_semantics<parallel>], iteration_bounds = array<i64: 2, 2>, scalar_prefetch = 0 : i64, scratch_operands = 0 : i64, tpu.core_type = #tpu.core_type<tc>, window_params = [{transform_indices = @transform_0, window_bounds = array<i64: 1, 18, 18, 8>}, {pipeline_mode = #tpu.pipeline_mode<synchronous>, transform_indices = @transform_1, window_bounds = array<i64: 72, 27>}, {pipeline_mode = #tpu.pipeline_mode<synchronous>, transform_indices = @transform_2, window_bounds = array<i64: 1, 27>}, {transform_indices = @transform_3, window_bounds = array<i64: 1, 128, 27>}]} {
    %c8_i32 = arith.constant 8 : i32
    %0 = arith.muli %arg1, %c8_i32 : i32
    %c0_i32 = arith.constant 0 : i32
    %1 = arith.addi %0, %c0_i32 : i32
    %c0 = arith.constant 0 : index
    %2 = arith.index_cast %1 : i32 to index
    %c0_0 = arith.constant 0 : index
    %c0_1 = arith.constant 0 : index
    %3 = vector.load %arg2[%c0, %2, %c0_0, %c0_1] : memref<1x18x18x8xf32, #tpu.memory_space<vmem>>, vector<1x8x18x8xf32>
    %4 = vector.shape_cast %3 : vector<1x8x18x8xf32> to vector<8x18x8xf32>
    %5 = vector.extract_strided_slice %4 {offsets = [0, 0, 0], sizes = [8, 16, 8], strides = [1, 1, 1]} : vector<8x18x8xf32> to vector<8x16x8xf32>
    %6 = vector.shape_cast %5 : vector<8x16x8xf32> to vector<128x8xf32>
    %7 = vector.extract_strided_slice %4 {offsets = [0, 1, 0], sizes = [8, 16, 8], strides = [1, 1, 1]} : vector<8x18x8xf32> to vector<8x16x8xf32>
    %8 = vector.shape_cast %7 : vector<8x16x8xf32> to vector<128x8xf32>
    %9 = vector.extract_strided_slice %4 {offsets = [0, 2, 0], sizes = [8, 16, 8], strides = [1, 1, 1]} : vector<8x18x8xf32> to vector<8x16x8xf32>
    %10 = vector.shape_cast %9 : vector<8x16x8xf32> to vector<128x8xf32>
    %c1_i32 = arith.constant 1 : i32
    %11 = arith.addi %0, %c1_i32 : i32
    %c0_2 = arith.constant 0 : index
    %12 = arith.index_cast %11 : i32 to index
    %c0_3 = arith.constant 0 : index
    %c0_4 = arith.constant 0 : index
    %13 = vector.load %arg2[%c0_2, %12, %c0_3, %c0_4] : memref<1x18x18x8xf32, #tpu.memory_space<vmem>>, vector<1x8x18x8xf32>
    %14 = vector.shape_cast %13 : vector<1x8x18x8xf32> to vector<8x18x8xf32>
    %15 = vector.extract_strided_slice %14 {offsets = [0, 0, 0], sizes = [8, 16, 8], strides = [1, 1, 1]} : vector<8x18x8xf32> to vector<8x16x8xf32>
    %16 = vector.shape_cast %15 : vector<8x16x8xf32> to vector<128x8xf32>
    %17 = vector.extract_strided_slice %14 {offsets = [0, 1, 0], sizes = [8, 16, 8], strides = [1, 1, 1]} : vector<8x18x8xf32> to vector<8x16x8xf32>
    %18 = vector.shape_cast %17 : vector<8x16x8xf32> to vector<128x8xf32>
    %19 = vector.extract_strided_slice %14 {offsets = [0, 2, 0], sizes = [8, 16, 8], strides = [1, 1, 1]} : vector<8x18x8xf32> to vector<8x16x8xf32>
    %20 = vector.shape_cast %19 : vector<8x16x8xf32> to vector<128x8xf32>
    %c2_i32 = arith.constant 2 : i32
    %21 = arith.addi %0, %c2_i32 : i32
    %c0_5 = arith.constant 0 : index
    %22 = arith.index_cast %21 : i32 to index
    %c0_6 = arith.constant 0 : index
    %c0_7 = arith.constant 0 : index
    %23 = vector.load %arg2[%c0_5, %22, %c0_6, %c0_7] : memref<1x18x18x8xf32, #tpu.memory_space<vmem>>, vector<1x8x18x8xf32>
    %24 = vector.shape_cast %23 : vector<1x8x18x8xf32> to vector<8x18x8xf32>
    %25 = vector.extract_strided_slice %24 {offsets = [0, 0, 0], sizes = [8, 16, 8], strides = [1, 1, 1]} : vector<8x18x8xf32> to vector<8x16x8xf32>
    %26 = vector.shape_cast %25 : vector<8x16x8xf32> to vector<128x8xf32>
    %27 = vector.extract_strided_slice %24 {offsets = [0, 1, 0], sizes = [8, 16, 8], strides = [1, 1, 1]} : vector<8x18x8xf32> to vector<8x16x8xf32>
    %28 = vector.shape_cast %27 : vector<8x16x8xf32> to vector<128x8xf32>
    %29 = vector.extract_strided_slice %24 {offsets = [0, 2, 0], sizes = [8, 16, 8], strides = [1, 1, 1]} : vector<8x18x8xf32> to vector<8x16x8xf32>
    %30 = vector.shape_cast %29 : vector<8x16x8xf32> to vector<128x8xf32>
    %31 = tpu.concatenate %6, %8, %10, %16, %18, %20, %26, %28, %30 in 1 : vector<128x8xf32>, vector<128x8xf32>, vector<128x8xf32>, vector<128x8xf32>, vector<128x8xf32>, vector<128x8xf32>, vector<128x8xf32>, vector<128x8xf32>, vector<128x8xf32> -> vector<128x72xf32>
    %c0_8 = arith.constant 0 : index
    %c0_9 = arith.constant 0 : index
    %32 = vector.load %arg3[%c0_8, %c0_9] : memref<72x27xf32, #tpu.memory_space<vmem>>, vector<72x27xf32>
    %cst = arith.constant dense<0.000000e+00> : vector<128x27xf32>
    %33 = tpu.matmul %31, %32, %cst {dimension_numbers = #tpu.dot_dimension_numbers<[1], [0], [0], [1], [0, 0, 1, 1], [], []>} : vector<128x72xf32>, vector<72x27xf32>, vector<128x27xf32> -> vector<128x27xf32>
    %c0_10 = arith.constant 0 : index
    %c0_11 = arith.constant 0 : index
    %34 = vector.load %arg4[%c0_10, %c0_11] : memref<1x27xf32, #tpu.memory_space<vmem>>, vector<1x27xf32>
    %35 = vector.broadcast %34 : vector<1x27xf32> to vector<128x27xf32>
    %36 = arith.addf %33, %35 : vector<128x27xf32>
    %c0_12 = arith.constant 0 : index
    %c0_13 = arith.constant 0 : index
    %c0_14 = arith.constant 0 : index
    %37 = vector.load %arg5[%c0_12, %c0_13, %c0_14] : memref<1x128x27xf32, #tpu.memory_space<vmem>>, vector<1x128x27xf32>
    %38 = vector.shape_cast %37 : vector<1x128x27xf32> to vector<128x27xf32>
    %39 = vector.shape_cast %36 : vector<128x27xf32> to vector<1x128x27xf32>
    tpu.vector_store %arg5[%c0_12, %c0_13, %c0_14], %39 {strides = array<i32>} : memref<1x128x27xf32, #tpu.memory_space<vmem>>, vector<1x128x27xf32>,
    return
  }
  func.func @transform_0(%arg0: i32, %arg1: i32) -> (i32, i32, i32, i32) {
    %c0_i32 = arith.constant 0 : i32
    %c0_i32_0 = arith.constant 0 : i32
    %c0_i32_1 = arith.constant 0 : i32
    %c0_i32_2 = arith.constant 0 : i32
    return %arg0, %c0_i32, %c0_i32_0, %c0_i32_1 : i32, i32, i32, i32
  }
  func.func @transform_1(%arg0: i32, %arg1: i32) -> (i32, i32) {
    %c0_i32 = arith.constant 0 : i32
    %c0_i32_0 = arith.constant 0 : i32
    %c0_i32_1 = arith.constant 0 : i32
    return %c0_i32, %c0_i32_0 : i32, i32
  }
  func.func @transform_2(%arg0: i32, %arg1: i32) -> (i32, i32) {
    %c0_i32 = arith.constant 0 : i32
    %c0_i32_0 = arith.constant 0 : i32
    %c0_i32_1 = arith.constant 0 : i32
    return %c0_i32, %c0_i32_0 : i32, i32
  }
  func.func @transform_3(%arg0: i32, %arg1: i32) -> (i32, i32, i32) {
    %c0_i32 = arith.constant 0 : i32
    %c0_i32_0 = arith.constant 0 : i32
    return %arg0, %arg1, %c0_i32 : i32, i32, i32
  }
}

</mosaic_0001>

<bundles_post_ra>
// kernel: tpu_custom_call.1
= control target key start
LH: loop header
LB: loop body
LE: loop exit
PB: predicated region body
PF: predicated region fallthrough
CT: control target
= control target key end

     0   :  { %s1573_s12 = smov 0   ;;  %s1575_s13 = smov 0   ;;  %s2612_s0 = inlined_call_operand.vmem [shape: f32[2,18,18,8], index: 0, kind: input, shape index: {}]   ;;  %s2613_s1 = inlined_call_operand.vmem [shape: f32[72,27], index: 1, kind: input, shape index: {}]   ;;  %s2614_s2 = inlined_call_operand.vmem [shape: f32[1,27], index: 2, kind: input, shape index: {}]   ;;  %s2615_s3 = inlined_call_operand.vmem [shape: f32[2,256,27], index: 3, kind: output, shape index: {}]  }
   0x1   :  { %s1577_s14 = smov 0   ;;  %s1579_s15 = smov 0  }
   0x2   :  { %s1581_s16 = smov 0  }
   0x3 LB: > { %s22_s17 = sadd.s32 1, %s1535_s14  ;;  %s25_s18 = sadd.s32 1, %s1539_s15  ;;  %s1543_s16 = sphi %s1581_s16, %s13_s16   ;;  %s1539_s15 = sphi %s1579_s15, %s2644_s15   ;;  %s1535_s14 = sphi %s1577_s14, %s2643_s14   ;;  %s1531_s13 = sphi %s1575_s13, %s2642_s13   ;;  %s1527_s12 = sphi %s1573_s12, %s2641_s12  }
   0x4   : > { %p23_p0 = scmp.ge.s32.totalorder %s22_s17, 2  ;;  %p1351_p1 = scmp.ge.s32.totalorder %s1543_s16, 1 }
   0x5   : > { %p151_p2 = scmp.lt.s32.totalorder %s1543_s16, 5 }
   0x6   : > { %s2646_s17 = smov (%p23_p0, %s22_s17), 0  ;;  %s2648_s18 = smov (!%p23_p0, %s25_s18), %s1539_s15 }
   0x7   : > { %p152_p3 = pnand %p1351_p1, %p151_p2  ;;  %p27_p4 = scmp.ge.s32.totalorder %s2648_s18, 2 }
   0x9   : > { %s2650_s18 = smov (%p27_p4, %s2648_s18), 0  ;;  %155 = sbr.rel (%p152_p3) target bundleno = 608 (0x260), region = 32 }
   0xe   : > { %p179_p5 = scmp.lt.s32.totalorder %s1531_s13, 1  ;;  %s1357_s19 = smul.u32 192, %s1527_s12  ;;  %vm245_vm0 = vcmask 1046528   ;;  %vm286_vm1 = vcmask 1045504   ;;  %vm990_vm2 = vcmask 130048   ;;  %vm973_vm3 = vcmask 64512  }
   0xf   : > { %s1545_s25 = smov 8   ;;  %s1546_s26 = smov 16   ;;  %vm1007_vm4 = vcmask 195584   ;;  %vm1024_vm5 = vcmask 261120   ;;  %vm1041_vm6 = vcmask 326656   ;;  %vm1058_vm7 = vcmask 392192  }
  0x10   : > { %s2652_s13 = smov (!%p179_p5, %s1531_s13), 1  ;;  %s1547_s27 = smov 24   ;;  %vm1075_vm8 = vcmask 457728   ;;  %vm1092_vm9 = vcmask 523264   ;;  %vm1122_vm10 = vcmask 588800   ;;  %vm1236_vm11 = vcmask 220160  }
  0x11   : > { %s1455_s20 = smul.u32 432, %s2652_s13  ;;  %s1548_s28 = smov 32  }
  0x12   : > { %s1549_s29 = smov 40   ;;  %s1550_s30 = smov 56  }
  0x13   : > { %s183_s23 = scalar_lea.vmem %s2612_s0, %s1455_s20  ;;  %s1551_s4 = smov 48  }
  0x14   : > { %s1612_s24 = scalar_lea.vmem %s183_s23, %s1357_s19  ;;  %s1552_s5 = smov 64  }
  0x15   : > { %v1615_v0 = vld [vmem:[%s1612_s24 + $0x30] sm:$0xff]  ;;  %v1618_v1 = vld [vmem:[%s1612_s24 + $0x38] sm:$0xff]  ;;  %v1628_v5 = vld [vmem:[%s1612_s24 + $0x20] sm:$0xff] }
  0x16   : > { %v1621_v2 = vld [vmem:[%s1612_s24 + $0x18] sm:$0xff]  ;;  %v256_v3 = vrot.slane %v1615_v0, 1  ;;  %v1625_v4 = vrot.slane %v1618_v1, 1  ;;  %v1632_v7 = vld [vmem:[%s1612_s24] sm:$0xff]  ;;  %v1635_v8 = vld [vmem:[%s1612_s24 + $0x8] sm:$0xff]  ;;  %v1638_v9 = vrot.slane %v1628_v5, 1 }
  0x17   : > { %v251_v6 = vrot.slane %v1621_v2, 1  ;;  %v246_v10 = vrot.slane %v1632_v7, 1  ;;  %v247_v11 = vrot.slane %v1635_v8, 1  ;;  %v1643_v12 = vld [vmem:[%s1612_s24 + $0x40] sm:$0x3]  ;;  %v1677_v25 = vld [vmem:[%s1612_s24 + $0x68] sm:$0xff] }
  0x18   : > { %v1647_v13 = vsel %vm245_vm0, %v256_v3, %v1625_v4  ;;  %v1650_v14 = vld [vmem:[%s1612_s24 + $0x28] sm:$0x3]  ;;  %v1653_v15 = vld [vmem:[%s1612_s24 + $0x10] sm:$0x3]  ;;  %v259_v18 = vrot.slane %v1643_v12, 1  ;;  %v1674_v24 = vld [vmem:[%s1612_s24 + $0x60] sm:$0xff] }
  0x19   : > { %597 = vrot.lane.b32.xlu2 %v1647_v13, %s1545_s25  ;;  %v1659_v16 = vsel %vm245_vm0, %v251_v6, %v1638_v9  ;;  %v248_v17 = vsel %vm245_vm0, %v246_v10, %v247_v11  ;;  %v254_v19 = vrot.slane %v1650_v14, 1  ;;  %v249_v20 = vrot.slane %v1653_v15, 1  ;;  %v1680_v26 = vld [vmem:[%s1612_s24 + $0x50] sm:$0xff]  ;;  %v1683_v27 = vld [vmem:[%s1612_s24 + $0x58] sm:$0x3]  ;;  %v1686_v28 = vld [vmem:[%s1612_s24 + $0x48] sm:$0xff] }
  0x1a   : > { %593 = vrot.lane.b32.xlu1 %v1659_v16, %s1545_s25  ;;  %589 = vrot.lane.b32.xlu0 %v248_v17, %s1545_s25  ;;  %v260_v21 = vsel %vm245_vm0, %v1625_v4, %v259_v18  ;;  %v266_v29 = vrot.slane %v1674_v24, 1  ;;  %v1693_v30 = vrot.slane %v1677_v25, 1  ;;  %v1696_v31 = vrot.slane %v1680_v26, 1  ;;  %v1713_v37 = vld [vmem:[%s1612_s24 + $0x80] sm:$0xff]  ;;  %v1716_v38 = vld [vmem:[%s1612_s24 + $0x88] sm:$0x3] }
  0x1b   : > { %v255_v22 = vsel %vm245_vm0, %v1638_v9, %v254_v19  ;;  %v250_v23 = vsel %vm245_vm0, %v247_v11, %v249_v20  ;;  %v264_v32 = vrot.slane %v1683_v27, 1  ;;  %v2619_v33 = vrot.slane %v1686_v28, 1  ;;  %v1719_v39 = vld [vmem:[%s1612_s24 + $0x78] sm:$0xff]  ;;  %v1722_v40 = vld [vmem:[%s1612_s24 + $0x70] sm:$0x3]  ;;  %v1746_v48 = vld [vmem:[%s1612_s24 + $0xa8] sm:$0xff] }
  0x1c   : > { %v1702_v34 = vsel %vm245_vm0, %v266_v29, %v1693_v30  ;;  %v1730_v41 = vrot.slane %v1713_v37, 1  ;;  %v274_v42 = vrot.slane %v1716_v38, 1  ;;  %v2618_v43 = vrot.slane %v1719_v39, 1  ;;  %v1749_v49 = vld [vmem:[%s1612_s24 + $0xb0] sm:$0xff]  ;;  %v1752_v50 = vld [vmem:[%s1612_s24 + $0x98] sm:$0xff] }
  0x1d   : > { %v265_v35 = vsel %vm245_vm0, %v1696_v31, %v264_v32  ;;  %v1710_v36 = vsel %vm245_vm0, %v2619_v33, %v1696_v31  ;;  %v269_v44 = vrot.slane %v1722_v40, 1  ;;  %v1755_v51 = vld [vmem:[%s1612_s24 + $0xa0] sm:$0x3]  ;;  %v1758_v52 = vld [vmem:[%s1612_s24 + $0x90] sm:$0xff]  ;;  %v281_v53 = vrot.slane %v1746_v48, 1 }
  0x1e   : > { %v275_v45 = vsel %vm245_vm0, %v1730_v41, %v274_v42  ;;  %v1741_v46 = vsel %vm245_vm0, %v2618_v43, %v1730_v41  ;;  %v1766_v54 = vrot.slane %v1749_v49, 1  ;;  %v1769_v55 = vrot.slane %v1752_v50, 1  ;;  %v1784_v61 = vld [vmem:[%s1612_s24 + $0xb8] sm:$0x3] }
  0x1f   : > { %v270_v47 = vsel %vm245_vm0, %v1693_v30, %v269_v44  ;;  %v279_v56 = vrot.slane %v1755_v51, 1  ;;  %v276_v57 = vrot.slane %v1758_v52, 1  ;;  %v288_v62 = vrot.slane %v1635_v8, 2 }
  0x20   : > { %v1775_v58 = vsel %vm245_vm0, %v281_v53, %v1766_v54  ;;  %v290_v63 = vrot.slane %v1653_v15, 2  ;;  %v287_v3 = vrot.slane %v1632_v7, 2  ;;  %v284_v6 = vrot.slane %v1784_v61, 1 }
  0x21   : > { %599 = vrot.lane.b32.xlu2 %v260_v21, %s1545_s25  ;;  %v280_v59 = vsel %vm245_vm0, %v1769_v55, %v279_v56  ;;  %v1781_v60 = vsel %vm245_vm0, %v276_v57, %v1769_v55  ;;  %v297_v15 = vrot.slane %v1615_v0, 2  ;;  %v1804_v18 = vrot.slane %v1618_v1, 2 }
  0x22   : > { %595 = vrot.lane.b32.xlu1 %v255_v22, %s1545_s25  ;;  %591 = vrot.lane.b32.xlu0 %v250_v23, %s1545_s25  ;;  %v291_v10 = vsel %vm286_vm1, %v288_v62, %v290_v63  ;;  %v289_v11 = vsel %vm286_vm1, %v287_v3, %v288_v62  ;;  %v285_v17 = vsel %vm245_vm0, %v1766_v54, %v284_v6  ;;  %v1807_v19 = vrot.slane %v1628_v5, 2 }
  0x23   : > { %2627 = vst [vmem:[#allocation2_spill] sm:$0xff] %v1804_v18  ;;  %v295_v20 = vrot.slane %v1650_v14, 2  ;;  %v292_v21 = vrot.slane %v1621_v2, 2  ;;  %v1813_v22 = vsel %vm286_vm1, %v297_v15, %v1804_v18  ;;  %v1827_v14 = vrot.slane %v1680_v26, 2 }
  0x24   : > { %v305_v32 = vrot.slane %v1683_v27, 2  ;;  %v300_v42 = vrot.slane %v1643_v12, 2  ;;  %v2617_v12 = vrot.slane %v1719_v39, 2  ;;  %v1848_v27 = vrot.slane %v1713_v37, 2 }
  0x25   : > { %v296_v23 = vsel %vm286_vm1, %v1807_v19, %v295_v20  ;;  %v1819_v29 = vsel %vm286_vm1, %v292_v21, %v1807_v19  ;;  %v1851_v53 = vrot.slane %v1677_v25, 2  ;;  %v310_v56 = vrot.slane %v1722_v40, 2 }
  0x26   : > { %v306_v44 = vsel %vm286_vm1, %v1827_v14, %v305_v32  ;;  %v307_v57 = vrot.slane %v1674_v24, 2  ;;  %v1873_v40 = vrot.slane %v1752_v50, 2  ;;  %v320_v3 = vrot.slane %v1755_v51, 2 }
  0x27   : > { %2628 = vst [vmem:[#allocation3_spill] sm:$0xff] %v1851_v53  ;;  %v311_v62 = vsel %vm286_vm1, %v1851_v53, %v310_v56  ;;  %v317_v6 = vrot.slane %v1758_v52, 2  ;;  %v1891_v51 = vrot.slane %v1749_v49, 2  ;;  %v322_v20 = vrot.slane %v1746_v48, 2 }
  0x28   : > { %v1865_v63 = vsel %vm286_vm1, %v307_v57, %v1851_v53  ;;  %v1926_v57 = vld [vmem:[%s1612_s24 + $0xc8] sm:$0xff]  ;;  %v1969_v53 = vld [vmem:[%s1612_s24 + $0x70] sm:$0x3] }
  0x29   : > { %605 = vrot.lane.b32.xlu2 %v1702_v34, %s1545_s25  ;;  %2630 = vst [vmem:[#allocation5_spill] sm:$0xff] %v1969_v53 }
  0x2a   : > { %603 = vrot.lane.b32.xlu1 %v265_v35, %s1545_s25  ;;  %601 = vrot.lane.b32.xlu0 %v1710_v36, %s1545_s25  ;;  %v2616_v35 = vrot.slane %v1686_v28, 2 }
  0x31   : > { %611 = vrot.lane.b32.xlu2 %v275_v45, %s1545_s25  ;;  %v1838_v45 = vsel %vm286_vm1, %v2616_v35, %v1827_v14 }
  0x32   : > { %609 = vrot.lane.b32.xlu1 %v1741_v46, %s1545_s25  ;;  %607 = vrot.lane.b32.xlu0 %v270_v47, %s1545_s25  ;;  %v301_v47 = vsel %vm286_vm1, %v1804_v18, %v300_v42 }
  0x39   : > { %617 = vrot.lane.b32.xlu2 %v1775_v58, %s1545_s25 }
  0x3a   : > { %615 = vrot.lane.b32.xlu1 %v280_v59, %s1545_s25  ;;  %613 = vrot.lane.b32.xlu0 %v1781_v60, %s1545_s25  ;;  %v1859_v59 = vsel %vm286_vm1, %v2617_v12, %v1848_v27 }
  0x41   : > { %639 = vrot.lane.b32.xlu2 %v291_v10, %s1546_s26  ;;  %v315_v10 = vrot.slane %v1716_v38, 2  ;;  %v325_v38 = vrot.slane %v1784_v61, 2 }
  0x42   : > { %637 = vrot.lane.b32.xlu1 %v289_v11, %s1546_s26  ;;  %619 = vrot.lane.b32.xlu0 %v285_v17, %s1545_s25  ;;  %v321_v11 = vsel %vm286_vm1, %v1873_v40, %v320_v3  ;;  %v1882_v17 = vsel %vm286_vm1, %v317_v6, %v1873_v40  ;;  %v1932_v3 = vld [vmem:[%s1612_s24 + $0x28] sm:$0x3] }
  0x43   : > { %v316_v15 = vsel %vm286_vm1, %v1848_v27, %v315_v10  ;;  %v326_v21 = vsel %vm286_vm1, %v1891_v51, %v325_v38  ;;  %v381_v10 = vrot.slane %v1932_v3, 1 }
  0x45   : > { %v382_v38 = vsel %vm245_vm0, %v1638_v9, %v381_v10 }
  0x49   : > { %645 = vrot.lane.b32.xlu2 %v1813_v22, %s1546_s26 }
  0x4a   : > { %643 = vrot.lane.b32.xlu1 %v296_v23, %s1546_s26  ;;  %641 = vrot.lane.b32.xlu0 %v1819_v29, %s1546_s26  ;;  %v1899_v23 = vsel %vm286_vm1, %v322_v20, %v1891_v51  ;;  %v1945_v20 = vld [vmem:[%s1612_s24 + $0x58] sm:$0x3] }
  0x4b   : > { %v391_v35 = vrot.slane %v1945_v20, 1 }
  0x51   : > { %651 = vrot.lane.b32.xlu2 %v306_v44, %s1546_s26 }
  0x52   : > { %649 = vrot.lane.b32.xlu1 %v1838_v45, %s1546_s26  ;;  %647 = vrot.lane.b32.xlu0 %v301_v47, %s1546_s26 }
  0x59   : > { %657 = vrot.lane.b32.xlu2 %v1859_v59, %s1546_s26 }
  0x5a   : > { %655 = vrot.lane.b32.xlu1 %v311_v62, %s1546_s26  ;;  %653 = vrot.lane.b32.xlu0 %v1865_v63, %s1546_s26  ;;  %v1929_v62 = vld [vmem:[%s1612_s24 + $0xc0] sm:$0xff] }
  0x61   : > { %663 = vrot.lane.b32.xlu2 %v321_v11, %s1546_s26 }
  0x62   : > { %661 = vrot.lane.b32.xlu1 %v1882_v17, %s1546_s26  ;;  %659 = vrot.lane.b32.xlu0 %v316_v15, %s1546_s26 }
  0x69   : > { %685 = vrot.lane.b32.xlu2 %v1621_v2, %s1547_s27 }
  0x6a   : > { %667 = vrot.lane.b32.xlu1 %v326_v21, %s1546_s26  ;;  %665 = vrot.lane.b32.xlu0 %v1899_v23, %s1546_s26  ;;  %v1948_v21 = vld [vmem:[%s1612_s24 + $0x40] sm:$0x3] }
  0x6b   : > { %2629 = vst [vmem:[#allocation4_spill] sm:$0xff] %v1948_v21  ;;  %v386_v12 = vrot.slane %v1948_v21, 1 }
  0x71   : > { %691 = vrot.lane.b32.xlu2 %v1618_v1, %s1547_s27 }
  0x72   : > { %689 = vrot.lane.b32.xlu1 %v1615_v0, %s1547_s27  ;;  %687 = vrot.lane.b32.xlu0 %v1628_v5, %s1547_s27 }
  0x73   : > { %v598_v61 = vpop.permute.xlu2 %597 }
  0x79   : > { %697 = vrot.lane.b32.xlu2 %v1674_v24, %s1547_s27 }
  0x7a   : > { %695 = vrot.lane.b32.xlu1 %v1680_v26, %s1547_s27  ;;  %693 = vrot.lane.b32.xlu0 %v1686_v28, %s1547_s27 }
  0x7b   : > { %v1911_v32 = vpop.permute.xlu2 %599 }
  0x81   : > { %703 = vrot.lane.b32.xlu2 %v1713_v37, %s1547_s27 }
  0x82   : > { %701 = vrot.lane.b32.xlu1 %v1719_v39, %s1547_s27  ;;  %699 = vrot.lane.b32.xlu0 %v1677_v25, %s1547_s27 }
  0x83   : > { %v1916_v42 = vpop.permute.xlu2 %605 }
  0x89   : > { %709 = vrot.lane.b32.xlu2 %v1746_v48, %s1547_s27 }
  0x8a   : > { %707 = vrot.lane.b32.xlu1 %v1752_v50, %s1547_s27  ;;  %705 = vrot.lane.b32.xlu0 %v1758_v52, %s1547_s27 }
  0x8b   : > { %v1921_v44 = vpop.permute.xlu2 %611 }
  0x8c   : > { %v1923_v47 = vpop.permute.xlu1 %593  ;;  %v590_v56 = vpop.permute.xlu0 %589 }
  0x91   : > { %715 = vrot.lane.b32.xlu2 %v1926_v57, %s1547_s27 }
  0x92   : > { %713 = vrot.lane.b32.xlu1 %v1929_v62, %s1547_s27  ;;  %711 = vrot.lane.b32.xlu0 %v1749_v49, %s1547_s27 }
  0x93   : > { %v1937_v6 = vpop.permute.xlu2 %617 }
  0x94   : > { %v1940_v11 = vpop.permute.xlu1 %595  ;;  %v592_v15 = vpop.permute.xlu0 %591 }
  0x95   : > { %v975_v9 = vsel %vm973_vm3, %v1635_v8, %v592_v15  ;;  %v978_v8 = vsel %vm973_vm3, %v1615_v0, %v598_v61 }
  0x99   : > { %737 = vrot.lane.b32.xlu2 %v1647_v13, %s1548_s28 }
  0x9a   : > { %735 = vrot.lane.b32.xlu1 %v382_v38, %s1548_s28  ;;  %733 = vrot.lane.b32.xlu0 %v1659_v16, %s1548_s28  ;;  %v392_v38 = vsel %vm245_vm0, %v1696_v31, %v391_v35  ;;  %v387_v16 = vsel %vm245_vm0, %v1625_v4, %v386_v12 }
  0x9b   : > { %v640_v10 = vpop.permute.xlu2 %639 }
  0x9c   : > { %v604_v43 = vpop.permute.xlu1 %603  ;;  %v1960_v33 = vsel %vm990_vm2, %v975_v9, %v640_v10  ;;  %v1962_v18 = vpop.permute.xlu0 %601  ;;  %v396_v9 = vrot.slane %v1969_v53, 1 }
  0x9e   : > { %v397_v12 = vsel %vm245_vm0, %v1693_v30, %v396_v9 }
  0xa1   : > { %743 = vrot.lane.b32.xlu2 %v392_v38, %s1548_s28  ;;  %v1986_v38 = vld [vmem:[%s1612_s24 + $0xa0] sm:$0x3] }
  0xa2   : > { %741 = vrot.lane.b32.xlu1 %v1710_v36, %s1548_s28  ;;  %739 = vrot.lane.b32.xlu0 %v387_v16, %s1548_s28  ;;  %2631 = vst [vmem:[#allocation6_spill] sm:$0xff] %v1986_v38  ;;  %v1989_v36 = vld [vmem:[%s1612_s24 + $0x88] sm:$0x3]  ;;  %v406_v61 = vrot.slane %v1986_v38, 1  ;;  %v981_v16 = vsel %vm973_vm3, %v1680_v26, %v604_v43 }
  0xa3   : > { %v646_v15 = vpop.permute.xlu2 %645 }
  0xa4   : > { %v610_v10 = vpop.permute.xlu1 %609  ;;  %v1979_v31 = vsel %vm990_vm2, %v978_v8, %v646_v15  ;;  %v1981_v35 = vpop.permute.xlu0 %607  ;;  %v401_v15 = vrot.slane %v1989_v36, 1 }
  0xa5   : > { %v984_v26 = vsel %vm973_vm3, %v1719_v39, %v610_v10  ;;  %v976_v10 = vsel %vm973_vm3, %v1621_v2, %v1923_v47  ;;  %v2047_v2 = vrot.slane %v1926_v57, 2  ;;  %v2055_v47 = vrot.slane %v1926_v57, 1 }
  0xa9   : > { %749 = vrot.lane.b32.xlu2 %v1741_v46, %s1548_s28  ;;  %v407_v46 = vsel %vm245_vm0, %v1769_v55, %v406_v61 }
  0xaa   : > { %747 = vrot.lane.b32.xlu1 %v397_v12, %s1548_s28  ;;  %745 = vrot.lane.b32.xlu0 %v1702_v34, %s1548_s28  ;;  %v402_v12 = vsel %vm245_vm0, %v1730_v41, %v401_v15  ;;  %v977_v15 = vsel %vm973_vm3, %v1628_v5, %v1940_v11  ;;  %v453_v5 = vrot.slane %v1929_v62, 2  ;;  %v413_v11 = vrot.slane %v1929_v62, 1 }
  0xab   : > { %v652_v8 = vpop.permute.xlu2 %651 }
  0xac   : > { %v616_v9 = vpop.permute.xlu1 %615  ;;  %v2001_v21 = vsel %vm990_vm2, %v981_v16, %v652_v8  ;;  %v2003_v53 = vpop.permute.xlu0 %613  ;;  %v974_v16 = vsel %vm973_vm3, %v1632_v7, %v590_v56 }
  0xad   : > { %v987_v7 = vsel %vm973_vm3, %v1752_v50, %v616_v9  ;;  %v979_v9 = vsel %vm973_vm3, %v1618_v1, %v1911_v32  ;;  %v2077_v32 = vsel %vm245_vm0, %v413_v11, %v2055_v47 }
  0xb1   : > { %755 = vrot.lane.b32.xlu2 %v407_v46, %s1548_s28 }
  0xb2   : > { %753 = vrot.lane.b32.xlu1 %v1781_v60, %s1548_s28  ;;  %751 = vrot.lane.b32.xlu0 %v402_v12, %s1548_s28 }
  0xb3   : > { %v658_v43 = vpop.permute.xlu2 %657 }
  0xb4   : > { %v2018_v8 = vsel %vm990_vm2, %v984_v26, %v658_v43  ;;  %v638_v61 = vpop.permute.xlu1 %637  ;;  %v2020_v38 = vpop.permute.xlu0 %619 }
  0xb5   : > { %v991_v41 = vsel %vm990_vm2, %v974_v16, %v638_v61  ;;  %v980_v16 = vsel %vm973_vm3, %v1686_v28, %v1962_v18 }
  0xb9   : > { %805 = vrot.lane.b32.xlu2 %v1899_v23, %s1549_s29 }
  0xba   : > { %797 = vrot.lane.b32.xlu1 %v1859_v59, %s1549_s29  ;;  %757 = vrot.lane.b32.xlu0 %v1775_v58, %s1548_s28 }
  0xbb   : > { %v664_v56 = vpop.permute.xlu2 %663 }
  0xbc   : > { %v2038_v46 = vsel %vm990_vm2, %v987_v7, %v664_v56  ;;  %v644_v12 = vpop.permute.xlu1 %643  ;;  %v642_v59 = vpop.permute.xlu0 %641 }
  0xbd   : > { %v994_v26 = vsel %vm990_vm2, %v977_v15, %v644_v12  ;;  %v2042_v43 = vsel %vm990_vm2, %v976_v10, %v642_v59  ;;  %v1380_v12 = vld [vmem:[%s1612_s24 + $0xb8] sm:$0x3]  ;;  %v982_v59 = vsel %vm973_vm3, %v1674_v24, %v1916_v42  ;;  %v441_v42 = vrot.slane %v1989_v36, 2 }
  0xbe   : > { %v411_v18 = vrot.slane %v1380_v12, 1 }
  0xbf   : > { %v442_v36 = vsel %vm286_vm1, %v1848_v27, %v441_v42 }
  0xc1   : > { %893 = vrot.lane.b32.xlu2 %v1781_v60, %s1550_s30 }
  0xc2   : > { %853 = vrot.lane.b32.xlu1 %v1929_v62, %s1551_s4  ;;  %845 = vrot.lane.b32.xlu0 %v1758_v52, %s1551_s4  ;;  %v2073_v62 = vsel %vm286_vm1, %v453_v5, %v2047_v2  ;;  %v983_v5 = vsel %vm973_vm3, %v1677_v25, %v1981_v35 }
  0xc3   : > { %v686_v60 = vpop.permute.xlu2 %685 }
  0xc4   : > { %v2065_v61 = vsel %vm1007_vm4, %v991_v41, %v686_v60  ;;  %v650_v7 = vpop.permute.xlu1 %649  ;;  %v648_v56 = vpop.permute.xlu0 %647 }
  0xc5   : > { %v997_v10 = vsel %vm990_vm2, %v980_v16, %v650_v7  ;;  %v2069_v15 = vsel %vm990_vm2, %v979_v9, %v648_v56  ;;  %v412_v56 = vsel %vm245_vm0, %v1766_v54, %v411_v18 }
  0xc9   : > { %949 = vrot.lane.b32.xlu2 %v2073_v62, %s1552_s5 }
  0xca   : > { %941 = vrot.lane.b32.xlu1 %v1882_v17, %s1552_s5  ;;  %901 = vrot.lane.b32.xlu0 %v2077_v32, %s1550_s30 }
  0xcb   : > { %v692_v41 = vpop.permute.xlu2 %691 }
  0xcc   : > { %v2093_v11 = vsel %vm1007_vm4, %v994_v26, %v692_v41  ;;  %v656_v60 = vpop.permute.xlu1 %655  ;;  %v654_v9 = vpop.permute.xlu0 %653  ;;  %v985_v26 = vsel %vm973_vm3, %v1713_v37, %v1921_v44  ;;  %v986_v41 = vsel %vm973_vm3, %v1758_v52, %v2003_v53  ;;  %v451_v52 = vrot.slane %v1380_v12, 2 }
  0xcd   : > { %v1000_v16 = vsel %vm990_vm2, %v983_v5, %v656_v60  ;;  %v2097_v7 = vsel %vm990_vm2, %v982_v59, %v654_v9  ;;  %v988_v53 = vsel %vm973_vm3, %v1746_v48, %v1937_v6  ;;  %v989_v44 = vsel %vm973_vm3, %v1749_v49, %v2020_v38 }
  0xce   : > { %v452_v12 = vsel %vm286_vm1, %v1891_v51, %v451_v52 }
  0xd1   : > { %759 = vrot.lane.b32.xlu2 %v412_v56, %s1548_s28 }
  0xd2   : > { %789 = vrot.lane.b32.xlu1 %v1838_v45, %s1549_s29  ;;  %781 = vrot.lane.b32.xlu0 %v1819_v29, %s1549_s29 }
  0xd3   : > { %v698_v35 = vpop.permute.xlu2 %697 }
  0xd4   : > { %v2114_v18 = vsel %vm1007_vm4, %v997_v10, %v698_v35  ;;  %v662_v59 = vpop.permute.xlu1 %661  ;;  %v660_v5 = vpop.permute.xlu0 %659  ;;  %v1406_v35 = vld [vmem:[%s1612_s24 + $0xd0] sm:$0x3] }
  0xd5   : > { %v1003_v45 = vsel %vm990_vm2, %v986_v41, %v662_v59  ;;  %v2118_v29 = vsel %vm990_vm2, %v985_v26, %v660_v5 }
  0xd9   : > { %799 = vrot.lane.b32.xlu2 %v442_v36, %s1549_s29 }
  0xda   : > { %837 = vrot.lane.b32.xlu1 %v1674_v24, %s1551_s4  ;;  %829 = vrot.lane.b32.xlu0 %v1615_v0, %s1551_s4 }
  0xdb   : > { %v704_v37 = vpop.permute.xlu2 %703 }
  0xdc   : > { %v2134_v27 = vsel %vm1007_vm4, %v1000_v16, %v704_v37  ;;  %v668_v10 = vpop.permute.xlu1 %667  ;;  %v666_v24 = vpop.permute.xlu0 %665  ;;  %v582_v37 = vrot.slane %v1406_v35, 2 }
  0xdd   : > { %v1006_v60 = vsel %vm990_vm2, %v989_v44, %v668_v10  ;;  %v1005_v0 = vsel %vm990_vm2, %v988_v53, %v666_v24 }
  0xe1   : > { %885 = vrot.lane.b32.xlu2 %v1702_v34, %s1550_s30  ;;  %v1400_v34 = vld [vmem:[%s1612_s24 + $0xa0] sm:$0x3] }
  0xe2   : > { %877 = vrot.lane.b32.xlu1 %v1647_v13, %s1550_s30  ;;  %807 = vrot.lane.b32.xlu0 %v452_v12, %s1549_s29  ;;  %v542_v13 = vrot.slane %v1406_v35, 1  ;;  %v532_v41 = vrot.slane %v1400_v34, 1 }
  0xe3   : > { %v710_v6 = vpop.permute.xlu2 %709 }
  0xe4   : > { %v2146_v38 = vsel %vm1007_vm4, %v1003_v45, %v710_v6  ;;  %v690_v9 = vpop.permute.xlu1 %689  ;;  %v688_v16 = vpop.permute.xlu0 %687 }
  0xe5   : > { %v1010_v56 = vsel %vm1007_vm4, %v2042_v43, %v690_v9  ;;  %v2152_v42 = vsel %vm1007_vm4, %v1960_v33, %v688_v16 }
  0xe9   : > { %925 = vrot.lane.b32.xlu2 %v1813_v22, %s1552_s5 }
  0xea   : > { %855 = vrot.lane.b32.xlu1 %v1926_v57, %s1551_s4  ;;  %847 = vrot.lane.b32.xlu0 %v1752_v50, %s1551_s4  ;;  %v543_v57 = vsel %vm245_vm0, %v2055_v47, %v542_v13  ;;  %v533_v50 = vsel %vm245_vm0, %v1769_v55, %v532_v41  ;;  %v1388_v13 = vld [vmem:[%s1612_s24 + $0x40] sm:$0x3] }
  0xeb   : > { %v716_v26 = vpop.permute.xlu2 %715 }
  0xec   : > { %v2163_v43 = vsel %vm1007_vm4, %v1006_v60, %v716_v26  ;;  %v696_v59 = vpop.permute.xlu1 %695  ;;  %v694_v33 = vpop.permute.xlu0 %693  ;;  %v512_v26 = vrot.slane %v1388_v13, 1 }
  0xed   : > { %v1013_v5 = vsel %vm1007_vm4, %v2069_v15, %v696_v59  ;;  %v2169_v45 = vsel %vm1007_vm4, %v1979_v31, %v694_v33  ;;  %v421_v15 = vrot.slane %v1932_v3, 2  ;;  %v572_v31 = vrot.slane %v1400_v34, 2  ;;  %v1117_v59 = vld [vmem:[%s2613_s1 + $0x40] sm:$0xff]  ;;  %v1115_v33 = vld [vmem:[%s2613_s1 + $0x30] sm:$0xff] }
  0xee   : > { %v583_v3 = vsel %vm286_vm1, %v2047_v2, %v582_v37  ;;  %1429 = vmatpush.msra.mxu2 %v1117_v59  ;;  %1430 = vmatpush.msra.mxu3 %v1117_v59 }
  0xef   : > { %v422_v24 = vsel %vm286_vm1, %v1807_v19, %v421_v15  ;;  %v573_v60 = vsel %vm286_vm1, %v1873_v40, %v572_v31  ;;  %1178 = vmatpush.msra.mxu0 %v1117_v59  ;;  %1428 = vmatpush.msra.mxu1 %v1117_v59  ;;  %v1112_v31 = vld [vmem:[%s2613_s1 + $0x18] sm:$0xff] }
  0xf1   : > { %903 = vrot.lane.b32.xlu2 %v543_v57, %s1550_s30 }
  0xf2   : > { %895 = vrot.lane.b32.xlu1 %v533_v50, %s1550_s30  ;;  %933 = vrot.lane.b32.xlu0 %v1865_v63, %s1552_s5 }
  0xf3   : > { %v738_v36 = vpop.permute.xlu2 %737 }
  0xf4   : > { %v2181_v52 = vsel %vm1024_vm5, %v1010_v56, %v738_v36  ;;  %v702_v53 = vpop.permute.xlu1 %701  ;;  %v700_v44 = vpop.permute.xlu0 %699 }
  0xf5   : > { %v2185_v55 = vsel %vm1007_vm4, %v2097_v7, %v702_v53  ;;  %v2189_v10 = vsel %vm1007_vm4, %v2001_v21, %v700_v44  ;;  %v431_v21 = vrot.slane %v1945_v20, 2  ;;  %v2632_v53 = vld [vmem:[#allocation3_spill] sm:$0xff] }
  0xf7   : > { %v432_v56 = vsel %vm286_vm1, %v1827_v14, %v431_v21  ;;  %v1394_v14 = vld [vmem:[%s1612_s24 + $0x70] sm:$0x3] }
  0xf9   : > { %783 = vrot.lane.b32.xlu2 %v422_v24, %s1549_s29  ;;  %v2633_v24 = vld [vmem:[#allocation2_spill] sm:$0xff] }
  0xfa   : > { %951 = vrot.lane.b32.xlu1 %v583_v3, %s1552_s5  ;;  %943 = vrot.lane.b32.xlu0 %v573_v60, %s1552_s5  ;;  %v2287_v60 = vld [vmem:[%s1612_s24 + $0xe0] sm:$0xff] }
  0xfb   : > { %v744_v7 = vpop.permute.xlu2 %743 }
  0xfc   : > { %v2202_v12 = vsel %vm1024_vm5, %v1013_v5, %v744_v7  ;;  %v708_v19 = vpop.permute.xlu1 %707  ;;  %v706_v6 = vpop.permute.xlu0 %705  ;;  %v513_v5 = vsel %vm245_vm0, %v1625_v4, %v512_v26  ;;  %v552_v4 = vrot.slane %v1388_v13, 2  ;;  %v1110_v7 = vld [vmem:[%s2613_s1 + $0x8] sm:$0xff] }
  0xfd   : > { %v1019_v9 = vsel %vm1007_vm4, %v2118_v29, %v708_v19  ;;  %v2208_v16 = vsel %vm1007_vm4, %v2018_v8, %v706_v6  ;;  %v545_v6 = vrot.slane %v2287_v60, 1 }
  0xfe   : > { %v553_v3 = vsel %vm286_vm1, %v2633_v24, %v552_v4 }
 0x101   : > { %831 = vrot.lane.b32.xlu2 %v1618_v1, %s1551_s4 }
 0x102   : > { %761 = vrot.lane.b32.xlu1 %v2077_v32, %s1548_s28  ;;  %791 = vrot.lane.b32.xlu0 %v432_v56, %s1549_s29  ;;  %v522_v32 = vrot.slane %v1394_v14, 1 }
 0x103   : > { %v2217_v20 = vpop.permute.xlu2 %749 }
 0x104   : > { %v714_v35 = vpop.permute.xlu1 %713  ;;  %v712_v34 = vpop.permute.xlu0 %711 }
 0x105   : > { %v2220_v29 = vsel %vm1007_vm4, %v1005_v0, %v714_v35  ;;  %v2224_v8 = vsel %vm1007_vm4, %v2038_v46, %v712_v34  ;;  %v1109_v35 = vld [vmem:[%s2613_s1] sm:$0xff] }
 0x109   : > { %809 = vrot.lane.b32.xlu2 %v2073_v62, %s1549_s29 }
 0x10a   : > { %801 = vrot.lane.b32.xlu1 %v1882_v17, %s1549_s29  ;;  %839 = vrot.lane.b32.xlu0 %v1677_v25, %s1551_s4  ;;  %v1116_v25 = vld [vmem:[%s2613_s1 + $0x38] sm:$0xff] }
 0x10b   : > { %v756_v1 = vpop.permute.xlu2 %755  ;;  %1432 = vmatpush.msra.mxu2 %v1116_v25  ;;  %1433 = vmatpush.msra.mxu3 %v1116_v25 }
 0x10c   : > { %v2235_v0 = vsel %vm1024_vm5, %v1019_v9, %v756_v1  ;;  %v736_v41 = vpop.permute.xlu1 %735  ;;  %v734_v46 = vpop.permute.xlu0 %733  ;;  %1179 = vmatpush.msra.mxu0 %v1116_v25  ;;  %1431 = vmatpush.msra.mxu1 %v1116_v25  ;;  %v585_v1 = vrot.slane %v2287_v60, 2 }
 0x10d   : > { %v2242_v62 = vsel %vm1024_vm5, %v2152_v42, %v736_v41  ;;  %v2246_v17 = vsel %vm1024_vm5, %v2065_v61, %v734_v46  ;;  %v523_v42 = vsel %vm245_vm0, %v1693_v30, %v522_v32  ;;  %1435 = vmatpush.msra.mxu2 %v1115_v33  ;;  %v562_v61 = vrot.slane %v1394_v14, 2  ;;  %v1114_v30 = vld [vmem:[%s2613_s1 + $0x28] sm:$0xff]  ;;  %1436 = vmatpush.msra.mxu3 %v1115_v33  ;;  %v1383_v46 = vld [vmem:[%s1612_s24 + $0xd0] sm:$0x3] }
 0x10e   : > { %1180 = vmatpush.msra.mxu0 %v1115_v33  ;;  %1434 = vmatpush.msra.mxu1 %v1115_v33 }
 0x10f   : > { %1438 = vmatpush.msra.mxu2 %v1114_v30  ;;  %1439 = vmatpush.msra.mxu3 %v1114_v30  ;;  %v563_v44 = vsel %vm286_vm1, %v2632_v53, %v562_v61  ;;  %v2634_v61 = vld [vmem:[#allocation6_spill] sm:$0xff] }
 0x110   : > { %1181 = vmatpush.msra.mxu0 %v1114_v30  ;;  %1437 = vmatpush.msra.mxu1 %v1114_v30  ;;  %v446_v30 = vrot.slane %v2634_v61, 2  ;;  %v1409_v61 = vld [vmem:[%s1612_s24 + $0xe8] sm:$0x3] }
 0x111   : > { %849 = vrot.lane.b32.xlu2 %v1746_v48, %s1551_s4  ;;  %v1113_v48 = vld [vmem:[%s2613_s1 + $0x20] sm:$0xff] }
 0x112   : > { %887 = vrot.lane.b32.xlu1 %v523_v42, %s1550_s30  ;;  %879 = vrot.lane.b32.xlu0 %v513_v5, %s1550_s30  ;;  %v2343_v42 = vld [vmem:[%s1612_s24 + $0x50] sm:$0xff]  ;;  %v456_v5 = vrot.slane %v1383_v46, 2 }
 0x113   : > { %v2265_v57 = vpop.permute.xlu2 %805  ;;  %1441 = vmatpush.msra.mxu2 %v1113_v48  ;;  %1442 = vmatpush.msra.mxu3 %v1113_v48 }
 0x114   : > { %v742_v50 = vpop.permute.xlu1 %741  ;;  %v740_v15 = vpop.permute.xlu0 %739  ;;  %1182 = vmatpush.msra.mxu0 %v1113_v48  ;;  %1440 = vmatpush.msra.mxu1 %v1113_v48  ;;  %v1033_v48 = vsel %vm1024_vm5, %v2185_v55, %v2217_v20 }
 0x115   : > { %v2272_v36 = vsel %vm1024_vm5, %v2169_v45, %v742_v50  ;;  %v2276_v37 = vsel %vm1024_vm5, %v2093_v11, %v740_v15  ;;  %v1407_v45 = vld [vmem:[%s1612_s24 + $0xd8] sm:$0xff]  ;;  %1444 = vmatpush.msra.mxu2 %v1112_v31  ;;  %v1111_v11 = vld [vmem:[%s2613_s1 + $0x10] sm:$0xff]  ;;  %1445 = vmatpush.msra.mxu3 %v1112_v31  ;;  %v2635_v50 = vrot.slane %v1686_v28, 1 }
 0x116   : > { %v544_v21 = vrot.slane %v1407_v45, 1  ;;  %1183 = vmatpush.msra.mxu0 %v1112_v31  ;;  %1443 = vmatpush.msra.mxu1 %v1112_v31  ;;  %v457_v31 = vsel %vm286_vm1, %v2047_v2, %v456_v5  ;;  %v2638_v5 = vrot.slane %v1686_v28, 2 }
 0x117   : > { %1447 = vmatpush.msra.mxu2 %v1111_v11  ;;  %1448 = vmatpush.msra.mxu3 %v1111_v11 }
 0x118   : > { %1184 = vmatpush.msra.mxu0 %v1111_v11  ;;  %1446 = vmatpush.msra.mxu1 %v1111_v11  ;;  %v546_v13 = vsel %vm245_vm0, %v544_v21, %v545_v6  ;;  %v2370_v11 = vld [vmem:[%s1612_s24 + $0x80] sm:$0xff] }
 0x119   : > { %935 = vrot.lane.b32.xlu2 %v563_v44, %s1552_s5  ;;  %1450 = vmatpush.msra.mxu2 %v1110_v7  ;;  %v447_v44 = vsel %vm286_vm1, %v1873_v40, %v446_v30  ;;  %v587_v30 = vrot.slane %v1409_v61, 2 }
 0x11a   : > { %927 = vrot.lane.b32.xlu1 %v553_v3, %s1552_s5  ;;  %857 = vrot.lane.b32.xlu0 %v1407_v45, %s1551_s4 }
 0x11b   : > { %v2298_v19 = vpop.permute.xlu2 %893  ;;  %1451 = vmatpush.msra.mxu3 %v1110_v7  ;;  %1453 = vmatpush.msra.mxu2 %v1109_v35 }
 0x11c   : > { %v748_v9 = vpop.permute.xlu1 %747  ;;  %v746_v56 = vpop.permute.xlu0 %745  ;;  %1185 = vmatpush.msra.mxu0 %v1110_v7  ;;  %1449 = vmatpush.msra.mxu1 %v1110_v7 }
 0x11d   : > { %v2306_v34 = vsel %vm1024_vm5, %v2189_v10, %v748_v9  ;;  %v2310_v14 = vsel %vm1024_vm5, %v2114_v18, %v746_v56  ;;  %1454 = vmatpush.msra.mxu3 %v1109_v35  ;;  %v584_v18 = vrot.slane %v1407_v45, 2 }
 0x11e   : > { %1186 = vmatpush.msra.mxu0 %v1109_v35  ;;  %1452 = vmatpush.msra.mxu1 %v1109_v35 }
 0x121   : > { %945 = vrot.lane.b32.xlu2 %v1899_v23, %s1552_s5 }
 0x122   : > { %905 = vrot.lane.b32.xlu1 %v546_v13, %s1550_s30  ;;  %897 = vrot.lane.b32.xlu0 %v1775_v58, %s1550_s30  ;;  %v586_v58 = vsel %vm286_vm1, %v584_v18, %v585_v1  ;;  %v2636_v13 = vrot.slane %v1719_v39, 1 }
 0x123   : > { %v950_v10 = vpop.permute.xlu2 %949 }
 0x124   : > { %v754_v32 = vpop.permute.xlu1 %753  ;;  %v752_v26 = vpop.permute.xlu0 %751 }
 0x125   : > { %v2323_v41 = vsel %vm1024_vm5, %v2208_v16, %v754_v32  ;;  %v2327_v23 = vsel %vm1024_vm5, %v2134_v27, %v752_v26  ;;  %v416_v16 = vrot.slane %v1383_v46, 1  ;;  %v1403_v32 = vld [vmem:[%s1612_s24 + $0xb8] sm:$0x3]  ;;  %v565_v26 = vrot.slane %v2370_v11, 2 }
 0x127   : > { %v417_v27 = vsel %vm245_vm0, %v2055_v47, %v416_v16 }
 0x129   : > { %793 = vrot.lane.b32.xlu2 %v1865_v63, %s1549_s29 }
 0x12a   : > { %785 = vrot.lane.b32.xlu1 %v1813_v22, %s1549_s29  ;;  %953 = vrot.lane.b32.xlu0 %v586_v58, %s1552_s5  ;;  %v515_v22 = vrot.slane %v2343_v42, 1 }
 0x12b   : > { %v2338_v59 = vpop.permute.xlu2 %759 }
 0x12c   : > { %v798_v25 = vpop.permute.xlu1 %797  ;;  %v758_v33 = vpop.permute.xlu0 %757  ;;  %v516_v15 = vsel %vm245_vm0, %v2635_v50, %v515_v22 }
 0x12d   : > { %v1050_v3 = vsel %vm1041_vm6, %v1033_v48, %v798_v25  ;;  %v1037_v45 = vsel %vm1024_vm5, %v2146_v38, %v758_v33  ;;  %v525_v38 = vrot.slane %v2370_v11, 1  ;;  %v2637_v33 = vrot.slane %v1719_v39, 2 }
 0x12e   : > { %v1054_v40 = vsel %vm1041_vm6, %v1037_v45, %v2265_v57 }
 0x12f   : > { %v526_v18 = vsel %vm245_vm0, %v2636_v13, %v525_v38 }
 0x131   : > { %841 = vrot.lane.b32.xlu2 %v1719_v39, %s1551_s4  ;;  %v588_v39 = vsel %vm286_vm1, %v585_v1, %v587_v30  ;;  %v2639_v1 = vld [vmem:[#allocation5_spill] sm:$0xff] }
 0x132   : > { %833 = vrot.lane.b32.xlu1 %v1686_v28, %s1551_s4  ;;  %763 = vrot.lane.b32.xlu0 %v417_v27, %s1548_s28  ;;  %v566_v27 = vsel %vm286_vm1, %v2637_v33, %v565_v26  ;;  %s1354_s28 = sshll.u32 %s2652_s13, 5 }
 0x133   : > { %v2351_v63 = vpop.permute.xlu2 %799 }
 0x134   : > { %v854_v4 = vpop.permute.xlu1 %853  ;;  %v846_v47 = vpop.permute.xlu0 %845 }
 0x135   : > { %v1067_v7 = vsel %vm1058_vm7, %v1050_v3, %v846_v47  ;;  %v1071_v55 = vsel %vm1058_vm7, %v1054_v40, %v854_v4  ;;  %v577_v4 = vrot.slane %v1403_v32, 2  ;;  %v547_v47 = vrot.slane %v1409_v61, 1  ;;  %v2640_v3 = vld [vmem:[#allocation4_spill] sm:$0xff] }
 0x136   : > { %v1084_v9 = vsel %vm1075_vm8, %v1067_v7, %v2298_v19  ;;  %v537_v19 = vrot.slane %v1403_v32, 1  ;;  %v426_v45 = vrot.slane %v2640_v3, 2 }
 0x137   : > { %v578_v28 = vsel %vm286_vm1, %v1891_v51, %v577_v4  ;;  %v548_v48 = vsel %vm245_vm0, %v545_v6, %v547_v47 }
 0x138   : > { %v538_v25 = vsel %vm245_vm0, %v1766_v54, %v537_v19 }
 0x139   : > { %881 = vrot.lane.b32.xlu2 %v516_v15, %s1550_s30 }
 0x13a   : > { %811 = vrot.lane.b32.xlu1 %v457_v31, %s1549_s29  ;;  %803 = vrot.lane.b32.xlu0 %v447_v44, %s1549_s29  ;;  %v436_v44 = vrot.slane %v2639_v1, 2 }
 0x13b   : > { %v2378_v2 = vpop.permute.xlu2 %885 }
 0x13c   : > { %v942_v20 = vpop.permute.xlu1 %941  ;;  %v902_v21 = vpop.permute.xlu0 %901 }
 0x13d   : > { %v1088_v56 = vsel %vm1075_vm8, %v1071_v55, %v902_v21  ;;  %v1101_v35 = vsel %vm1092_vm9, %v1084_v9, %v942_v20  ;;  %v437_v55 = vsel %vm286_vm1, %v2632_v53, %v436_v44  ;;  %v1391_v20 = vld [vmem:[%s1612_s24 + $0x58] sm:$0x3]  ;;  %v1397_v9 = vld [vmem:[%s1612_s24 + $0x88] sm:$0x3]  ;;  %s1353_s24 = sshll.u32 %s1527_s12, 4 }
 0x13e   : > { %1418 = vmatmul.msk.f32.vlgmr.msra.gmra.mxu2 %vm1122_vm10, %v1101_v35  ;;  %v1105_v57 = vsel %vm1092_vm9, %v1088_v56, %v950_v10  ;;  %v555_v10 = vrot.slane %v2343_v42, 2  ;;  %v527_v56 = vrot.slane %v1397_v9, 1  ;;  %v517_v35 = vrot.slane %v1391_v20, 1  ;;  %p187_p6 = scmp.lt.s32.totalorder %s1353_s24, 31 }
 0x13f   : > { %1422 = vmatmul.msk.f32.vlgmr.msra.gmra.mxu3 %vm1122_vm10, %v1105_v57 }
 0x140   : > { %v518_v53 = vsel %vm245_vm0, %v515_v22, %v517_v35  ;;  %s2654_s24 = smov (!%p187_p6, %s1353_s24), 31 }
 0x141   : > { %859 = vrot.lane.b32.xlu2 %v2287_v60, %s1551_s4 }
 0x142   : > { %851 = vrot.lane.b32.xlu1 %v1749_v49, %s1551_s4  ;;  %889 = vrot.lane.b32.xlu0 %v526_v18, %s1550_s30  ;;  %v556_v49 = vsel %vm286_vm1, %v2638_v5, %v555_v10  ;;  %v528_v18 = vsel %vm245_vm0, %v525_v38, %v527_v56 }
 0x143   : > { %v926_v16 = vpop.permute.xlu2 %925 }
 0x144   : > { %v790_v58 = vpop.permute.xlu1 %789  ;;  %v782_v46 = vpop.permute.xlu0 %781 }
 0x145   : > { %v1042_v31 = vsel %vm1041_vm6, %v2246_v17, %v782_v46  ;;  %v427_v17 = vsel %vm286_vm1, %v2633_v24, %v426_v45  ;;  %v1046_v24 = vsel %vm1041_vm6, %v2272_v36, %v790_v58  ;;  %v567_v46 = vrot.slane %v1397_v9, 2 }
 0x146   : > { %v1038_v36 = vsel %vm1024_vm5, %v2224_v8, %v2338_v59 }
 0x147   : > { %v568_v58 = vsel %vm286_vm1, %v565_v26, %v567_v46 }
 0x149   : > { %899 = vrot.lane.b32.xlu2 %v538_v25, %s1550_s30 }
 0x14a   : > { %937 = vrot.lane.b32.xlu1 %v566_v27, %s1552_s5  ;;  %929 = vrot.lane.b32.xlu0 %v556_v49, %s1552_s5 }
 0x14b   : > { %v904_v15 = vpop.permute.xlu2 %903 }
 0x14c   : > { %v838_v50 = vpop.permute.xlu1 %837  ;;  %v830_v54 = vpop.permute.xlu0 %829 }
 0x14d   : > { %v1059_v51 = vsel %vm1058_vm7, %v1042_v31, %v830_v54  ;;  %v1063_v32 = vsel %vm1058_vm7, %v1046_v24, %v838_v50 }
 0x151   : > { %955 = vrot.lane.b32.xlu2 %v588_v39, %s1552_s5 }
 0x152   : > { %947 = vrot.lane.b32.xlu1 %v578_v28, %s1552_s5  ;;  %907 = vrot.lane.b32.xlu0 %v548_v48, %s1550_s30 }
 0x153   : > { %v784_v21 = vpop.permute.xlu2 %783 }
 0x154   : > { %v878_v60 = vpop.permute.xlu1 %877  ;;  %v808_v7 = vpop.permute.xlu0 %807  ;;  %v1043_v44 = vsel %vm1041_vm6, %v2242_v62, %v784_v21 }
 0x155   : > { %v1076_v6 = vsel %vm1075_vm8, %v1059_v51, %v878_v60  ;;  %v1055_v33 = vsel %vm1041_vm6, %v1038_v36, %v808_v7 }
 0x156   : > { %v1093_v40 = vsel %vm1092_vm9, %v1076_v6, %v926_v16  ;;  %v557_v16 = vrot.slane %v1391_v20, 2 }
 0x157   : > { %1410 = vmatmul.msk.f32.vlgmr.msra.gmra.mxu0 %vm1122_vm10, %v1093_v40 }
 0x159   : > { %835 = vrot.lane.b32.xlu2 %v2343_v42, %s1551_s4  ;;  %v1080_v42 = vsel %vm1075_vm8, %v1063_v32, %v2378_v2  ;;  %v1051_v2 = vsel %vm1041_vm6, %v2327_v23, %v2351_v63 }
 0x15a   : > { %795 = vrot.lane.b32.xlu1 %v437_v55, %s1549_s29  ;;  %787 = vrot.lane.b32.xlu0 %v427_v17, %s1549_s29  ;;  %s190_s29 = sadd.s32 %s1354_s28, %s2654_s24 }
 0x15b   : > { %v832_v19 = vpop.permute.xlu2 %831  ;;  %s1355_s12 = sshll.u32 %s190_s29, 3 }
 0x15c   : > { %v856_v57 = vpop.permute.xlu1 %855  ;;  %v848_v13 = vpop.permute.xlu0 %847  ;;  %v1060_v3 = vsel %vm1058_vm7, %v1043_v44, %v832_v19  ;;  %s2528_s10 = scalar_lea.vmem %s2615_s3, %s1355_s12 }
 0x15d   : > { %v1072_v27 = vsel %vm1058_vm7, %v1055_v33, %v856_v57  ;;  %v1068_v5 = vsel %vm1058_vm7, %v1051_v2, %v848_v13 }
 0x161   : > { %891 = vrot.lane.b32.xlu2 %v528_v18, %s1550_s30 }
 0x162   : > { %883 = vrot.lane.b32.xlu1 %v518_v53, %s1550_s30  ;;  %843 = vrot.lane.b32.xlu0 %v2370_v11, %s1551_s4  ;;  %v558_v11 = vsel %vm286_vm1, %v555_v10, %v557_v16  ;;  %v1089_v10 = vsel %vm1075_vm8, %v1072_v27, %v904_v15 }
 0x163   : > { %v810_v49 = vpop.permute.xlu2 %809 }
 0x164   : > { %v896_v38 = vpop.permute.xlu1 %895  ;;  %v934_v25 = vpop.permute.xlu0 %933 }
 0x165   : > { %v1097_v22 = vsel %vm1092_vm9, %v1080_v42, %v934_v25  ;;  %v1085_v8 = vsel %vm1075_vm8, %v1068_v5, %v896_v38 }
 0x166   : > { %1414 = vmatmul.msk.f32.vlgmr.msra.gmra.mxu1 %vm1122_vm10, %v1097_v22 }
 0x16a   : > { %939 = vrot.lane.b32.xlu1 %v568_v58, %s1552_s5  ;;  %931 = vrot.lane.b32.xlu0 %v558_v11, %s1552_s5 }
 0x16b   : > { %v850_v4 = vpop.permute.xlu2 %849 }
 0x16c   : > { %v952_v59 = vpop.permute.xlu1 %951  ;;  %v944_v26 = vpop.permute.xlu0 %943 }
 0x16d   : > { %v1102_v61 = vsel %vm1092_vm9, %v1085_v8, %v944_v26  ;;  %v1106_v30 = vsel %vm1092_vm9, %v1089_v10, %v952_v59 }
 0x16e   : > { %1419 = vmatmul.msk.f32.gmra.mxu2 %vm1122_vm10, %v1102_v61  ;;  %1423 = vmatmul.msk.f32.gmra.mxu3 %vm1122_vm10, %v1106_v30 }
 0x173   : > { %v936_v54 = vpop.permute.xlu2 %935 }
 0x174   : > { %v762_v23 = vpop.permute.xlu1 %761  ;;  %v792_v63 = vpop.permute.xlu0 %791 }
 0x175   : > { %v1047_v39 = vsel %vm1041_vm6, %v2202_v12, %v792_v63  ;;  %v1039_v9 = vsel %vm1024_vm5, %v2220_v29, %v762_v23 }
 0x176   : > { %v1056_v56 = vsel %vm1041_vm6, %v1039_v9, %v810_v49 }
 0x17b   : > { %v946_v45 = vpop.permute.xlu2 %945 }
 0x17c   : > { %v802_v47 = vpop.permute.xlu1 %801  ;;  %v840_v50 = vpop.permute.xlu0 %839 }
 0x17d   : > { %v1064_v15 = vsel %vm1058_vm7, %v1047_v39, %v840_v50  ;;  %v1052_v6 = vsel %vm1041_vm6, %v2323_v41, %v802_v47 }
 0x17e   : > { %v1069_v55 = vsel %vm1058_vm7, %v1052_v6, %v850_v4 }
 0x183   : > { %v794_v20 = vpop.permute.xlu2 %793 }
 0x184   : > { %v888_v28 = vpop.permute.xlu1 %887  ;;  %v880_v48 = vpop.permute.xlu0 %879  ;;  %v1048_v36 = vsel %vm1041_vm6, %v2310_v14, %v794_v20  ;;  %v2517_v14 = vld [vmem:[%s2614_s2] ss:$0 sm:$0xff] }
 0x185   : > { %v1081_v31 = vsel %vm1075_vm8, %v1064_v15, %v888_v28  ;;  %v1077_v51 = vsel %vm1075_vm8, %v1060_v3, %v880_v48 }
 0x186   : > { %v1098_v1 = vsel %vm1092_vm9, %v1081_v31, %v936_v54 }
 0x187   : > { %1415 = vmatmul.msk.f32.gmra.mxu1 %vm1122_vm10, %v1098_v1 }
 0x18b   : > { %v842_v53 = vpop.permute.xlu2 %841 }
 0x18c   : > { %v928_v60 = vpop.permute.xlu1 %927  ;;  %v858_v12 = vpop.permute.xlu0 %857  ;;  %v1065_v58 = vsel %vm1058_vm7, %v1048_v36, %v842_v53 }
 0x18d   : > { %v1094_v7 = vsel %vm1092_vm9, %v1077_v51, %v928_v60  ;;  %v1073_v35 = vsel %vm1058_vm7, %v1056_v56, %v858_v12 }
 0x18e   : > { %1411 = vmatmul.msk.f32.gmra.mxu0 %vm1122_vm10, %v1094_v7 }
 0x193   : > { %v882_v19 = vpop.permute.xlu2 %881 }
 0x194   : > { %v906_v40 = vpop.permute.xlu1 %905  ;;  %v898_v17 = vpop.permute.xlu0 %897 }
 0x195   : > { %v1086_v62 = vsel %vm1075_vm8, %v1069_v55, %v898_v17  ;;  %v1090_v41 = vsel %vm1075_vm8, %v1073_v35, %v906_v40 }
 0x196   : > { %v1103_v21 = vsel %vm1092_vm9, %v1086_v62, %v946_v45 }
 0x197   : > { %1420 = vmatmul.msk.f32.gmra.mxu2 %vm1122_vm10, %v1103_v21 }
 0x19b   : > { %v860_v16 = vpop.permute.xlu2 %859 }
 0x19c   : > { %v786_v57 = vpop.permute.xlu1 %785  ;;  %v954_v13 = vpop.permute.xlu0 %953 }
 0x19d   : > { %v1107_v18 = vsel %vm1092_vm9, %v1090_v41, %v954_v13  ;;  %v1044_v42 = vsel %vm1041_vm6, %v2181_v52, %v786_v57 }
 0x19e   : > { %1424 = vmatmul.msk.f32.gmra.mxu3 %vm1122_vm10, %v1107_v18 }
 0x1a3   : > { %v900_v11 = vpop.permute.xlu2 %899 }
 0x1a4   : > { %v834_v24 = vpop.permute.xlu1 %833  ;;  %v764_v32 = vpop.permute.xlu0 %763 }
 0x1a5   : > { %v1061_v22 = vsel %vm1058_vm7, %v1044_v42, %v834_v24  ;;  %v1040_v59 = vsel %vm1024_vm5, %v2163_v43, %v764_v32 }
 0x1a6   : > { %v1078_v33 = vsel %vm1075_vm8, %v1061_v22, %v882_v19 }
 0x1ab   : > { %v956_v63 = vpop.permute.xlu2 %955 }
 0x1ac   : > { %v812_v29 = vpop.permute.xlu1 %811  ;;  %v804_v46 = vpop.permute.xlu0 %803 }
 0x1ad   : > { %v1053_v26 = vsel %vm1041_vm6, %v2235_v0, %v804_v46  ;;  %v1057_v10 = vsel %vm1041_vm6, %v1040_v59, %v812_v29 }
 0x1ae   : > { %v1074_v0 = vsel %vm1058_vm7, %v1057_v10, %v860_v16 }
 0x1b3   : > { %v836_v31 = vpop.permute.xlu2 %835 }
 0x1b4   : > { %v852_v38 = vpop.permute.xlu1 %851  ;;  %v890_v25 = vpop.permute.xlu0 %889 }
 0x1b5   : > { %v1082_v27 = vsel %vm1075_vm8, %v1065_v58, %v890_v25  ;;  %v1070_v49 = vsel %vm1058_vm7, %v1053_v26, %v852_v38 }
 0x1b6   : > { %v1087_v4 = vsel %vm1075_vm8, %v1070_v49, %v900_v11 }
 0x1bb   : > { %v892_v7 = vpop.permute.xlu2 %891 }
 0x1bc   : > { %v938_v2 = vpop.permute.xlu1 %937  ;;  %v930_v5 = vpop.permute.xlu0 %929 }
 0x1bd   : > { %v1095_v8 = vsel %vm1092_vm9, %v1078_v33, %v930_v5  ;;  %v1099_v52 = vsel %vm1092_vm9, %v1082_v27, %v938_v2 }
 0x1be   : > { %1412 = vmatmul.msk.f32.gmra.mxu0 %vm1122_vm10, %v1095_v8  ;;  %1416 = vmatmul.msk.f32.gmra.mxu1 %vm1122_vm10, %v1099_v52 }
 0x1c1   : > { %v1212_v61 = vpop.f32.mrf.mxu2 }
 0x1c2   : > { %v1213_v30 = vadd.f32 %v2517_v14, %v1212_v61  ;;  %v1224_v23 = vpop.f32.mrf.mxu3 }
 0x1c3   : > { %v1225_v43 = vadd.f32 %v2517_v14, %v1224_v23 }
 0x1c4   : > { %1245 = vst.msk [vmem:[%s2528_s10 + $0x40] sm:$0xff] %vm1236_vm11, %v1213_v30  ;;  %v948_v47 = vpop.permute.xlu1 %947  ;;  %v908_v50 = vpop.permute.xlu0 %907 }
 0x1c5   : > { %1249 = vst.msk [vmem:[%s2528_s10 + $0x60] sm:$0xff] %vm1236_vm11, %v1225_v43  ;;  %v1091_v54 = vsel %vm1075_vm8, %v1074_v0, %v908_v50  ;;  %v1104_v39 = vsel %vm1092_vm9, %v1087_v4, %v948_v47 }
 0x1c6   : > { %1421 = vmatmul.msk.f32.gmra.mxu2 %vm1122_vm10, %v1104_v39  ;;  %v1108_v15 = vsel %vm1092_vm9, %v1091_v54, %v956_v63 }
 0x1c7   : > { %1425 = vmatmul.msk.f32.gmra.mxu3 %vm1122_vm10, %v1108_v15 }
 0x1cc   : > { %v796_v28 = vpop.permute.xlu1 %795  ;;  %v788_v48 = vpop.permute.xlu0 %787 }
 0x1cd   : > { %v1049_v51 = vsel %vm1041_vm6, %v2306_v34, %v796_v28  ;;  %v1045_v60 = vsel %vm1041_vm6, %v2276_v37, %v788_v48 }
 0x1ce   : > { %v1062_v6 = vsel %vm1058_vm7, %v1045_v60, %v836_v31 }
 0x1d4   : > { %v884_v1 = vpop.permute.xlu1 %883  ;;  %v1188_v44 = vpop.f32.mrf.mxu0 }
 0x1d5   : > { %v1189_v3 = vadd.f32 %v2517_v14, %v1188_v44  ;;  %v844_v45 = vpop.permute.xlu0 %843  ;;  %v1079_v17 = vsel %vm1075_vm8, %v1062_v6, %v884_v1 }
 0x1d6   : > { %v1066_v12 = vsel %vm1058_vm7, %v1049_v51, %v844_v45 }
 0x1d7   : > { %1237 = vst.msk [vmem:[%s2528_s10] sm:$0xff] %vm1236_vm11, %v1189_v3  ;;  %v1083_v40 = vsel %vm1075_vm8, %v1066_v12, %v892_v7 }
 0x1dc   : > { %v940_v55 = vpop.permute.xlu1 %939 }
 0x1dd   : > { %v932_v20 = vpop.permute.xlu0 %931  ;;  %v1100_v62 = vsel %vm1092_vm9, %v1083_v40, %v940_v55 }
 0x1de   : > { %v1096_v34 = vsel %vm1092_vm9, %v1079_v17, %v932_v20  ;;  %1417 = vmatmul.msk.f32.gmra.mxu1 %vm1122_vm10, %v1100_v62 }
 0x1df   : > { %1413 = vmatmul.msk.f32.gmra.mxu0 %vm1122_vm10, %v1096_v34 }
 0x1e3   : > { %v1200_v37 = vpop.f32.mrf.mxu1 }
 0x1e4   : > { %v1201_v21 = vadd.f32 %v2517_v14, %v1200_v37 }
 0x1e6   : > { %1241 = vst.msk [vmem:[%s2528_s10 + $0x20] sm:$0xff] %vm1236_vm11, %v1201_v21 }
 0x1f1   : > { %v1215_v9 = vpop.f32.mrf.mxu2  ;;  %v1227_v56 = vpop.f32.mrf.mxu3 }
 0x1f2   : > { %v1216_v35 = vadd.f32 %v2517_v14, %v1215_v9  ;;  %v1228_v41 = vadd.f32 %v2517_v14, %v1227_v56 }
 0x1f4   : > { %1246 = vst.msk [vmem:[%s2528_s10 + $0x48] sm:$0xff] %vm1236_vm11, %v1216_v35 }
 0x1f5   : > { %1250 = vst.msk [vmem:[%s2528_s10 + $0x68] sm:$0xff] %vm1236_vm11, %v1228_v41 }
 0x204   : > { %v1203_v57 = vpop.f32.mrf.mxu1 }
 0x205   : > { %v1204_v13 = vadd.f32 %v2517_v14, %v1203_v57 }
 0x207   : > { %1242 = vst.msk [vmem:[%s2528_s10 + $0x28] sm:$0xff] %vm1236_vm11, %v1204_v13 }
 0x20b   : > { %v1191_v18 = vpop.f32.mrf.mxu0 }
 0x20c   : > { %v1192_v53 = vadd.f32 %v2517_v14, %v1191_v18 }
 0x20e   : > { %1238 = vst.msk [vmem:[%s2528_s10 + $0x8] sm:$0xff] %vm1236_vm11, %v1192_v53 }
 0x21a   : > { %v1218_v24 = vpop.f32.mrf.mxu2 }
 0x21b   : > { %v1219_v32 = vadd.f32 %v2517_v14, %v1218_v24 }
 0x21d   : > { %1247 = vst.msk [vmem:[%s2528_s10 + $0x50] sm:$0xff] %vm1236_vm11, %v1219_v32 }
 0x221   : > { %v1230_v19 = vpop.f32.mrf.mxu3 }
 0x222   : > { %v1231_v29 = vadd.f32 %v2517_v14, %v1230_v19 }
 0x224   : > { %1251 = vst.msk [vmem:[%s2528_s10 + $0x70] sm:$0xff] %vm1236_vm11, %v1231_v29 }
 0x23b   : > { %v1194_v46 = vpop.f32.mrf.mxu0  ;;  %v1206_v16 = vpop.f32.mrf.mxu1 }
 0x23c   : > { %v1195_v38 = vadd.f32 %v2517_v14, %v1194_v46  ;;  %v1207_v25 = vadd.f32 %v2517_v14, %v1206_v16 }
 0x23e   : > { %1239 = vst.msk [vmem:[%s2528_s10 + $0x10] sm:$0xff] %vm1236_vm11, %v1195_v38 }
 0x23f   : > { %1243 = vst.msk [vmem:[%s2528_s10 + $0x30] sm:$0xff] %vm1236_vm11, %v1207_v25 }
 0x249   : > { %v1221_v42 = vpop.f32.mrf.mxu2 }
 0x24a   : > { %v1222_v22 = vadd.f32 %v2517_v14, %v1221_v42  ;;  %v1233_v36 = vpop.f32.mrf.mxu3 }
 0x24b   : > { %v1234_v58 = vadd.f32 %v2517_v14, %v1233_v36 }
 0x24c   : > { %1248 = vst.msk [vmem:[%s2528_s10 + $0x58] sm:$0xff] %vm1236_vm11, %v1222_v22 }
 0x24d   : > { %1252 = vst.msk [vmem:[%s2528_s10 + $0x78] sm:$0xff] %vm1236_vm11, %v1234_v58 }
 0x25b   : > { %v1209_v11 = vpop.f32.mrf.mxu1 }
 0x25c   : > { %v1197_v33 = vpop.f32.mrf.mxu0  ;;  %v1210_v27 = vadd.f32 %v2517_v14, %v1209_v11 }
 0x25d   : > { %v1198_v2 = vadd.f32 %v2517_v14, %v1197_v33 }
 0x25e   : > { %1244 = vst.msk [vmem:[%s2528_s10 + $0x38] sm:$0xff] %vm1236_vm11, %v1210_v27 }
 0x25f   : > { %1240 = vst.msk [vmem:[%s2528_s10 + $0x18] sm:$0xff] %vm1236_vm11, %v1198_v2 }
 0x260 PF: > { %s13_s16 = sadd.s32 1, %s1543_s16   ;;  %s2641_s12 = smov %s1535_s14 }
 0x261   : > { %p10_p7 = scmp.ge.s32.totalorder %s13_s16, 6   ;;  %s2642_s13 = smov %s1539_s15 }
 0x262   : > { %s2643_s14 = smov %s2646_s17  ;;  %s2644_s15 = smov %s2650_s18 }
 0x263   :  { %12 = sbr.rel (!%p10_p7) target bundleno = 3 (0x3), region = 65 }

</bundles_post_ra>
